<compile_context>
chip_gen: v7x
topology: tpu7x:2x2x1
jax: 0.10.0
libtpu: 0.0.40
codegen_flags: <defaults>
</compile_context>

<pallas_src>
import jax
import jax.numpy as jnp
from jax.experimental import pallas as pl
from jax.experimental.pallas import tpu as pltpu


def _round_up(x, m):
    return ((x + m - 1) // m) * m


def _make_conv_stats_kernel(offsets, tq):
    """Kernel 1: fused per-tap conv matmuls + masked BN partial statistics."""
    n_taps = len(offsets)

    def kernel(xa_ref, xb_ref, w_ref, mask_ref, y_ref, stats_ref):
        xa = xa_ref[0]                                    # (Cin_p, tq)   bf16
        xb = xb_ref[0]                                    # (Cin_p, tq)   bf16 (halo block)
        xw = jnp.concatenate([xa, xb], axis=1)            # (Cin_p, 2*tq) bf16
        cin = xa.shape[0]

        acc = None
        for t in range(n_taps):                           # static tap loop
            off = offsets[t]                              # static int, < tq
            if off == 0:
                xs = xa
            else:
                # Columns [off, off+tq) of the two-block window (static slice).
                xs = jax.lax.slice(xw, (0, off), (cin, off + tq))
            part = jnp.dot(w_ref[t], xs,                  # (Cout_p, Cin_p)@(Cin_p, tq)
                           preferred_element_type=jnp.float32)
            acc = part if acc is None else acc + part     # (Cout_p, tq) f32

        # Lane-dense bf16 store of the conv output (stats use the f32 acc).
        y_ref[0] = acc.astype(y_ref.dtype)

        # Partial BN statistics over VALID frame positions only.
        accv = acc * mask_ref[...]                        # (Cout_p, tq)
        stats_ref[0, 0, :, 0:1] = jnp.sum(accv, axis=1, keepdims=True)
        stats_ref[0, 0, :, 1:2] = jnp.sum(accv * accv, axis=1, keepdims=True)

    return kernel


def _affine_kernel(y_ref, scale_ref, shift_ref, o_ref):
    """Kernel 2: o = y * scale + shift (per-channel folded BatchNorm affine)."""
    y = y_ref[0].astype(jnp.float32)                      # (Cout_p, tq2)
    o_ref[0] = (y * scale_ref[...] + shift_ref[...]).astype(o_ref.dtype)


def conv_and_norm(x_nchw, weight, bias, gamma, beta, *, padding, eps=1e-5,
                  block_q=512, max_affine_block_q=4096):
    """x_nchw: (N, Cin, H, W); weight: (Cout, Cin, kh, kw) — PyTorch conventions."""
    N, Cin, H, W = x_nchw.shape
    Cout, Cin_w, kh, kw = weight.shape
    assert Cin_w == Cin
    p = padding

    # Training-mode BatchNorm subtracts the batch mean, so the constant conv
    # bias cancels exactly; kept in the signature for interface parity only.
    del bias

    Hp, Wp = H + 2 * p, W + 2 * p
    H_out, W_out = Hp - kh + 1, Wp - kw + 1
    assert H_out > 0 and W_out > 0

    # Flattened-frame tap offsets (row stride Wp): tap (dy, dx) -> dy*Wp + dx.
    offsets = [dy * Wp + dx for dy in range(kh) for dx in range(kw)]
    off_max = max(offsets)

    # q-frame: output (h, w) lives at q = h*Wp + w.  Positions with w >= W_out
    # (and the block tail) are computed as garbage, masked out of BN stats and
    # sliced away at the end.  tq > off_max so a tap window spans <= 2 blocks.
    tq = _round_up(max(block_q, off_max + 1), 128)
    Lq = H_out * Wp
    n_q = pl.cdiv(Lq, tq)
    Lq_pad = n_q * tq
    Lin_pad = _round_up(max((n_q + 1) * tq, Hp * Wp), tq)

    # Small sublane-friendly channel padding (never padded to 128).
    Cin_p = _round_up(Cin, 8)
    Cout_p = _round_up(Cout, 8)

    # --- glue: channel-major (== NCHW), spatially padded, flattened, bf16 ----
    xp = jnp.pad(x_nchw, ((0, 0), (0, Cin_p - Cin), (p, p), (p, p)))
    xq = xp.reshape(N, Cin_p, Hp * Wp)
    xq = jnp.pad(xq, ((0, 0), (0, 0), (0, Lin_pad - Hp * Wp)))
    xq = xq.astype(jnp.bfloat16)                                  # (N, Cin_p, Lin_pad)

    # Per-tap weights, transposed for the (Cout, Cin) @ (Cin, tq) matmul.
    w_taps = jnp.transpose(weight, (2, 3, 0, 1))                  # (kh, kw, Cout, Cin)
    w_taps = jnp.pad(w_taps, ((0, 0), (0, 0), (0, Cout_p - Cout), (0, Cin_p - Cin)))
    w_taps = w_taps.reshape(kh * kw, Cout_p, Cin_p).astype(jnp.bfloat16)

    # Static validity mask over the q-frame (1.0 = real output position).
    qidx = jnp.arange(Lq_pad, dtype=jnp.int32)
    valid = ((qidx // Wp) < H_out) & ((qidx % Wp) < W_out)
    valid = valid.astype(jnp.float32).reshape(1, Lq_pad)

    # --- kernel 1: fused conv (per-tap matmuls) + masked BN partial stats ----
    conv_kernel = _make_conv_stats_kernel(offsets, tq)
    flops = 2 * N * Lq_pad * Cin_p * Cout_p * kh * kw
    bytes_acc = int(2 * xq.size * 2 + w_taps.size * 2 + valid.size * 4
                    + N * Lq_pad * Cout_p * 2 + N * n_q * Cout_p * 2 * 4)
    y_q, stats = pl.pallas_call(
        conv_kernel,
        grid=(N, n_q),
        in_specs=[
            pl.BlockSpec((1, Cin_p, tq), lambda n, i: (n, 0, i)),      # current q-block
            pl.BlockSpec((1, Cin_p, tq), lambda n, i: (n, 0, i + 1)),  # halo (next) block
            pl.BlockSpec((kh * kw, Cout_p, Cin_p), lambda n, i: (0, 0, 0)),
            pl.BlockSpec((1, tq), lambda n, i: (0, i)),
        ],
        out_specs=[
            pl.BlockSpec((1, Cout_p, tq), lambda n, i: (n, 0, i)),
            pl.BlockSpec((1, 1, Cout_p, 2), lambda n, i: (n, i, 0, 0)),
        ],
        out_shape=[
            jax.ShapeDtypeStruct((N, Cout_p, Lq_pad), jnp.bfloat16),   # bf16 intermediate
            jax.ShapeDtypeStruct((N, n_q, Cout_p, 2), jnp.float32),    # per-block partials
        ],
        compiler_params=pltpu.CompilerParams(
            dimension_semantics=("parallel", "parallel"),
            vmem_limit_bytes=48 * 1024 * 1024),
        cost_estimate=pl.CostEstimate(flops=flops, transcendentals=0,
                                      bytes_accessed=bytes_acc),
    )(xq, xq, w_taps, valid)

    # --- fold BN stats into a per-channel scale/shift (tiny, in XLA) ---------
    count = N * H_out * W_out
    s = jnp.sum(stats, axis=(0, 1))                               # (Cout_p, 2)
    mean = s[:, 0] / count
    var = s[:, 1] / count - mean * mean                           # biased var (training BN)
    inv = jax.lax.rsqrt(var + eps)
    g = jnp.pad(gamma.astype(jnp.float32), (0, Cout_p - Cout))
    b = jnp.pad(beta.astype(jnp.float32), (0, Cout_p - Cout))
    scale = (g * inv).reshape(Cout_p, 1)
    shift = (b - mean * g * inv).reshape(Cout_p, 1)

    # --- kernel 2: y*scale + shift, larger lane-dense tiles, no transpose ----
    m_best = 1
    for cand in range(1, n_q + 1):
        if n_q % cand == 0 and cand * tq <= max_affine_block_q:
            m_best = cand
    tq2 = m_best * tq
    n_q2 = n_q // m_best
    out_dtype = x_nchw.dtype
    flops2 = 2 * N * Cout_p * Lq_pad
    bytes2 = int(N * Lq_pad * Cout_p * (2 + jnp.dtype(out_dtype).itemsize)
                 + 2 * Cout_p * 4)
    out_q = pl.pallas_call(
        _affine_kernel,
        grid=(N, n_q2),
        in_specs=[
            pl.BlockSpec((1, Cout_p, tq2), lambda n, i: (n, 0, i)),
            pl.BlockSpec((Cout_p, 1), lambda n, i: (0, 0)),
            pl.BlockSpec((Cout_p, 1), lambda n, i: (0, 0)),
        ],
        out_specs=pl.BlockSpec((1, Cout_p, tq2), lambda n, i: (n, 0, i)),
        out_shape=jax.ShapeDtypeStruct((N, Cout_p, Lq_pad), out_dtype),
        compiler_params=pltpu.CompilerParams(
            dimension_semantics=("parallel", "parallel")),
        cost_estimate=pl.CostEstimate(flops=flops2, transcendentals=0,
                                      bytes_accessed=bytes2),
    )(y_q, scale, shift)

    # --- glue: pull the valid frame positions out (cheap strided slice only) -
    out = out_q[:, :Cout, :H_out * Wp].reshape(N, Cout, H_out, Wp)[..., :W_out]
    return out


def _reference(x_nchw, weight, bias, gamma, beta, *, padding, eps=1e-5):
    """Pure-JAX reference: conv (bf16 operands, f32 accumulation, matching the
    kernel's MXU precision) + bias + training-mode BatchNorm, all in f32."""
    y = jax.lax.conv_general_dilated(
        x_nchw.astype(jnp.bfloat16), weight.astype(jnp.bfloat16),
        window_strides=(1, 1), padding=[(padding, padding)] * 2,
        dimension_numbers=("NCHW", "OIHW", "NCHW"),
        preferred_element_type=jnp.float32)
    y = y + bias.reshape(1, -1, 1, 1).astype(jnp.float32)
    mean = jnp.mean(y, axis=(0, 2, 3), keepdims=True)
    var = jnp.mean((y - mean) ** 2, axis=(0, 2, 3), keepdims=True)
    return (y - mean) * jax.lax.rsqrt(var + eps) * gamma.reshape(1, -1, 1, 1) \
        + beta.reshape(1, -1, 1, 1)


if __name__ == "__main__":
    # Small, forward-consistent shapes.
    N, Cin, H, W = 2, 4, 16, 16
    Cout, ksize, pad = 8, 3, 1

    key = jax.random.PRNGKey(0)
    k_x, k_w, k_b = jax.random.split(key, 3)

    x = jax.random.normal(k_x, (N, Cin, H, W), dtype=jnp.float32)

    # Deterministic parameter init (Conv2d-style uniform bounds; BN default affine).
    fan_in = Cin * ksize * ksize
    bound = 1.0 / (fan_in ** 0.5)
    conv_w = jax.random.uniform(k_w, (Cout, Cin, ksize, ksize),
                                minval=-bound, maxval=bound, dtype=jnp.float32)
    conv_b = jax.random.uniform(k_b, (Cout,), minval=-bound, maxval=bound,
                                dtype=jnp.float32)
    bn_gamma = jnp.ones((Cout,), jnp.float32)   # BatchNorm2d default weight
    bn_beta = jnp.zeros((Cout,), jnp.float32)   # BatchNorm2d default bias

    # block_q=256 -> Lq=288 gives a 2-step q grid (exercises the cross-block
    # halo window and cross-block BN stat folding).
    out = conv_and_norm(x, conv_w, conv_b, bn_gamma, bn_beta, padding=pad,
                        block_q=256)
    out = jax.block_until_ready(out)

    ref = _reference(x, conv_w, conv_b, bn_gamma, bn_beta, padding=pad)
    assert out.shape == (N, Cout, H, W)
    # Tolerance reflects the bf16 storage of the conv activations (the f32
    # reference keeps y in f32); structural errors would be O(1), far above it.
    assert jnp.allclose(out, ref, atol=3e-2, rtol=3e-2), "mismatch vs reference"

    print("KERNEL_OK")
</pallas_src>

<mosaic_0001>
module attributes {stable_mosaic.version = 11 : i64} {
  func.func @kernel(%arg0: i32, %arg1: i32, %arg2: memref<1x8x256xbf16, #tpu.memory_space<vmem>>, %arg3: memref<1x8x256xbf16, #tpu.memory_space<vmem>>, %arg4: memref<9x8x8xbf16, #tpu.memory_space<vmem>>, %arg5: memref<1x256xf32, #tpu.memory_space<vmem>>, %arg6: memref<1x8x256xbf16, #tpu.memory_space<vmem>>, %arg7: memref<1x1x8x2xf32, #tpu.memory_space<vmem>>) attributes {dimension_semantics = [#tpu.dimension_semantics<parallel>, #tpu.dimension_semantics<parallel>], iteration_bounds = array<i64: 2, 2>, scalar_prefetch = 0 : i64, scratch_operands = 0 : i64, tpu.core_type = #tpu.core_type<tc>, window_params = [{transform_indices = @transform_0, window_bounds = array<i64: 1, 8, 256>}, {transform_indices = @transform_1, window_bounds = array<i64: 1, 8, 256>}, {pipeline_mode = #tpu.pipeline_mode<synchronous>, transform_indices = @transform_2, window_bounds = array<i64: 9, 8, 8>}, {transform_indices = @transform_3, window_bounds = array<i64: 1, 256>}, {transform_indices = @transform_4, window_bounds = array<i64: 1, 8, 256>}, {transform_indices = @transform_5, window_bounds = array<i64: 1, 1, 8, 2>}]} {
    %c0 = arith.constant 0 : index
    %c0_0 = arith.constant 0 : index
    %c0_1 = arith.constant 0 : index
    %0 = vector.load %arg2[%c0, %c0_0, %c0_1] : memref<1x8x256xbf16, #tpu.memory_space<vmem>>, vector<1x8x256xbf16>
    %1 = vector.shape_cast %0 : vector<1x8x256xbf16> to vector<8x256xbf16>
    %c0_2 = arith.constant 0 : index
    %c0_3 = arith.constant 0 : index
    %c0_4 = arith.constant 0 : index
    %2 = vector.load %arg3[%c0_2, %c0_3, %c0_4] : memref<1x8x256xbf16, #tpu.memory_space<vmem>>, vector<1x8x256xbf16>
    %3 = vector.shape_cast %2 : vector<1x8x256xbf16> to vector<8x256xbf16>
    %4 = tpu.concatenate %1, %3 in 1 : vector<8x256xbf16>, vector<8x256xbf16> -> vector<8x512xbf16>
    %c0_5 = arith.constant 0 : index
    %c0_6 = arith.constant 0 : index
    %c0_7 = arith.constant 0 : index
    %5 = vector.load %arg4[%c0_5, %c0_6, %c0_7] : memref<9x8x8xbf16, #tpu.memory_space<vmem>>, vector<1x8x8xbf16>
    %6 = vector.shape_cast %5 : vector<1x8x8xbf16> to vector<8x8xbf16>
    %cst = arith.constant dense<0.000000e+00> : vector<8x256xf32>
    %7 = tpu.matmul %6, %1, %cst {dimension_numbers = #tpu.dot_dimension_numbers<[1], [0], [0], [1], [0, 0, 1, 1], [], []>} : vector<8x8xbf16>, vector<8x256xbf16>, vector<8x256xf32> -> vector<8x256xf32>
    %8 = vector.extract_strided_slice %4 {offsets = [0, 1], sizes = [8, 256], strides = [1, 1]} : vector<8x512xbf16> to vector<8x256xbf16>
    %c1 = arith.constant 1 : index
    %c0_8 = arith.constant 0 : index
    %c0_9 = arith.constant 0 : index
    %9 = vector.load %arg4[%c1, %c0_8, %c0_9] : memref<9x8x8xbf16, #tpu.memory_space<vmem>>, vector<1x8x8xbf16>
    %10 = vector.shape_cast %9 : vector<1x8x8xbf16> to vector<8x8xbf16>
    %cst_10 = arith.constant dense<0.000000e+00> : vector<8x256xf32>
    %11 = tpu.matmul %10, %8, %cst_10 {dimension_numbers = #tpu.dot_dimension_numbers<[1], [0], [0], [1], [0, 0, 1, 1], [], []>} : vector<8x8xbf16>, vector<8x256xbf16>, vector<8x256xf32> -> vector<8x256xf32>
    %12 = arith.addf %7, %11 : vector<8x256xf32>
    %13 = vector.extract_strided_slice %4 {offsets = [0, 2], sizes = [8, 256], strides = [1, 1]} : vector<8x512xbf16> to vector<8x256xbf16>
    %c2 = arith.constant 2 : index
    %c0_11 = arith.constant 0 : index
    %c0_12 = arith.constant 0 : index
    %14 = vector.load %arg4[%c2, %c0_11, %c0_12] : memref<9x8x8xbf16, #tpu.memory_space<vmem>>, vector<1x8x8xbf16>
    %15 = vector.shape_cast %14 : vector<1x8x8xbf16> to vector<8x8xbf16>
    %cst_13 = arith.constant dense<0.000000e+00> : vector<8x256xf32>
    %16 = tpu.matmul %15, %13, %cst_13 {dimension_numbers = #tpu.dot_dimension_numbers<[1], [0], [0], [1], [0, 0, 1, 1], [], []>} : vector<8x8xbf16>, vector<8x256xbf16>, vector<8x256xf32> -> vector<8x256xf32>
    %17 = arith.addf %12, %16 : vector<8x256xf32>
    %18 = vector.extract_strided_slice %4 {offsets = [0, 18], sizes = [8, 256], strides = [1, 1]} : vector<8x512xbf16> to vector<8x256xbf16>
    %c3 = arith.constant 3 : index
    %c0_14 = arith.constant 0 : index
    %c0_15 = arith.constant 0 : index
    %19 = vector.load %arg4[%c3, %c0_14, %c0_15] : memref<9x8x8xbf16, #tpu.memory_space<vmem>>, vector<1x8x8xbf16>
    %20 = vector.shape_cast %19 : vector<1x8x8xbf16> to vector<8x8xbf16>
    %cst_16 = arith.constant dense<0.000000e+00> : vector<8x256xf32>
    %21 = tpu.matmul %20, %18, %cst_16 {dimension_numbers = #tpu.dot_dimension_numbers<[1], [0], [0], [1], [0, 0, 1, 1], [], []>} : vector<8x8xbf16>, vector<8x256xbf16>, vector<8x256xf32> -> vector<8x256xf32>
    %22 = arith.addf %17, %21 : vector<8x256xf32>
    %23 = vector.extract_strided_slice %4 {offsets = [0, 19], sizes = [8, 256], strides = [1, 1]} : vector<8x512xbf16> to vector<8x256xbf16>
    %c4 = arith.constant 4 : index
    %c0_17 = arith.constant 0 : index
    %c0_18 = arith.constant 0 : index
    %24 = vector.load %arg4[%c4, %c0_17, %c0_18] : memref<9x8x8xbf16, #tpu.memory_space<vmem>>, vector<1x8x8xbf16>
    %25 = vector.shape_cast %24 : vector<1x8x8xbf16> to vector<8x8xbf16>
    %cst_19 = arith.constant dense<0.000000e+00> : vector<8x256xf32>
    %26 = tpu.matmul %25, %23, %cst_19 {dimension_numbers = #tpu.dot_dimension_numbers<[1], [0], [0], [1], [0, 0, 1, 1], [], []>} : vector<8x8xbf16>, vector<8x256xbf16>, vector<8x256xf32> -> vector<8x256xf32>
    %27 = arith.addf %22, %26 : vector<8x256xf32>
    %28 = vector.extract_strided_slice %4 {offsets = [0, 20], sizes = [8, 256], strides = [1, 1]} : vector<8x512xbf16> to vector<8x256xbf16>
    %c5 = arith.constant 5 : index
    %c0_20 = arith.constant 0 : index
    %c0_21 = arith.constant 0 : index
    %29 = vector.load %arg4[%c5, %c0_20, %c0_21] : memref<9x8x8xbf16, #tpu.memory_space<vmem>>, vector<1x8x8xbf16>
    %30 = vector.shape_cast %29 : vector<1x8x8xbf16> to vector<8x8xbf16>
    %cst_22 = arith.constant dense<0.000000e+00> : vector<8x256xf32>
    %31 = tpu.matmul %30, %28, %cst_22 {dimension_numbers = #tpu.dot_dimension_numbers<[1], [0], [0], [1], [0, 0, 1, 1], [], []>} : vector<8x8xbf16>, vector<8x256xbf16>, vector<8x256xf32> -> vector<8x256xf32>
    %32 = arith.addf %27, %31 : vector<8x256xf32>
    %33 = vector.extract_strided_slice %4 {offsets = [0, 36], sizes = [8, 256], strides = [1, 1]} : vector<8x512xbf16> to vector<8x256xbf16>
    %c6 = arith.constant 6 : index
    %c0_23 = arith.constant 0 : index
    %c0_24 = arith.constant 0 : index
    %34 = vector.load %arg4[%c6, %c0_23, %c0_24] : memref<9x8x8xbf16, #tpu.memory_space<vmem>>, vector<1x8x8xbf16>
    %35 = vector.shape_cast %34 : vector<1x8x8xbf16> to vector<8x8xbf16>
    %cst_25 = arith.constant dense<0.000000e+00> : vector<8x256xf32>
    %36 = tpu.matmul %35, %33, %cst_25 {dimension_numbers = #tpu.dot_dimension_numbers<[1], [0], [0], [1], [0, 0, 1, 1], [], []>} : vector<8x8xbf16>, vector<8x256xbf16>, vector<8x256xf32> -> vector<8x256xf32>
    %37 = arith.addf %32, %36 : vector<8x256xf32>
    %38 = vector.extract_strided_slice %4 {offsets = [0, 37], sizes = [8, 256], strides = [1, 1]} : vector<8x512xbf16> to vector<8x256xbf16>
    %c7 = arith.constant 7 : index
    %c0_26 = arith.constant 0 : index
    %c0_27 = arith.constant 0 : index
    %39 = vector.load %arg4[%c7, %c0_26, %c0_27] : memref<9x8x8xbf16, #tpu.memory_space<vmem>>, vector<1x8x8xbf16>
    %40 = vector.shape_cast %39 : vector<1x8x8xbf16> to vector<8x8xbf16>
    %cst_28 = arith.constant dense<0.000000e+00> : vector<8x256xf32>
    %41 = tpu.matmul %40, %38, %cst_28 {dimension_numbers = #tpu.dot_dimension_numbers<[1], [0], [0], [1], [0, 0, 1, 1], [], []>} : vector<8x8xbf16>, vector<8x256xbf16>, vector<8x256xf32> -> vector<8x256xf32>
    %42 = arith.addf %37, %41 : vector<8x256xf32>
    %43 = vector.extract_strided_slice %4 {offsets = [0, 38], sizes = [8, 256], strides = [1, 1]} : vector<8x512xbf16> to vector<8x256xbf16>
    %c8 = arith.constant 8 : index
    %c0_29 = arith.constant 0 : index
    %c0_30 = arith.constant 0 : index
    %44 = vector.load %arg4[%c8, %c0_29, %c0_30] : memref<9x8x8xbf16, #tpu.memory_space<vmem>>, vector<1x8x8xbf16>
    %45 = vector.shape_cast %44 : vector<1x8x8xbf16> to vector<8x8xbf16>
    %cst_31 = arith.constant dense<0.000000e+00> : vector<8x256xf32>
    %46 = tpu.matmul %45, %43, %cst_31 {dimension_numbers = #tpu.dot_dimension_numbers<[1], [0], [0], [1], [0, 0, 1, 1], [], []>} : vector<8x8xbf16>, vector<8x256xbf16>, vector<8x256xf32> -> vector<8x256xf32>
    %47 = arith.addf %42, %46 : vector<8x256xf32>
    %48 = arith.truncf %47 : vector<8x256xf32> to vector<8x256xbf16>
    %c0_32 = arith.constant 0 : index
    %c0_33 = arith.constant 0 : index
    %c0_34 = arith.constant 0 : index
    %49 = vector.load %arg6[%c0_32, %c0_33, %c0_34] : memref<1x8x256xbf16, #tpu.memory_space<vmem>>, vector<1x8x256xbf16>
    %50 = vector.shape_cast %49 : vector<1x8x256xbf16> to vector<8x256xbf16>
    %51 = vector.shape_cast %48 : vector<8x256xbf16> to vector<1x8x256xbf16>
    tpu.vector_store %arg6[%c0_32, %c0_33, %c0_34], %51 {strides = array<i32>} : memref<1x8x256xbf16, #tpu.memory_space<vmem>>, vector<1x8x256xbf16>,
    %c0_35 = arith.constant 0 : index
    %c0_36 = arith.constant 0 : index
    %52 = vector.load %arg5[%c0_35, %c0_36] : memref<1x256xf32, #tpu.memory_space<vmem>>, vector<1x256xf32>
    %53 = vector.broadcast %52 : vector<1x256xf32> to vector<8x256xf32>
    %54 = arith.mulf %47, %53 : vector<8x256xf32>
    %cst_37 = arith.constant dense<0.000000e+00> : vector<8xf32>
    %55 = vector.multi_reduction <add>, %54, %cst_37 [1] : vector<8x256xf32> to vector<8xf32>
    %56 = vector.shape_cast %55 : vector<8xf32> to vector<8x1xf32>
    %c0_38 = arith.constant 0 : index
    %c0_39 = arith.constant 0 : index
    %c0_40 = arith.constant 0 : index
    %c0_41 = arith.constant 0 : index
    %57 = vector.load %arg7[%c0_38, %c0_39, %c0_40, %c0_41] : memref<1x1x8x2xf32, #tpu.memory_space<vmem>>, vector<1x1x8x1xf32>
    %58 = vector.shape_cast %57 : vector<1x1x8x1xf32> to vector<8x1xf32>
    %59 = vector.shape_cast %56 : vector<8x1xf32> to vector<1x1x8x1xf32>
    tpu.vector_store %arg7[%c0_38, %c0_39, %c0_40, %c0_41], %59 {strides = array<i32>} : memref<1x1x8x2xf32, #tpu.memory_space<vmem>>, vector<1x1x8x1xf32>,
    %60 = arith.mulf %54, %54 : vector<8x256xf32>
    %cst_42 = arith.constant dense<0.000000e+00> : vector<8xf32>
    %61 = vector.multi_reduction <add>, %60, %cst_42 [1] : vector<8x256xf32> to vector<8xf32>
    %62 = vector.shape_cast %61 : vector<8xf32> to vector<8x1xf32>
    %c0_43 = arith.constant 0 : index
    %c0_44 = arith.constant 0 : index
    %c0_45 = arith.constant 0 : index
    %c1_46 = arith.constant 1 : index
    %63 = vector.load %arg7[%c0_43, %c0_44, %c0_45, %c1_46] : memref<1x1x8x2xf32, #tpu.memory_space<vmem>>, vector<1x1x8x1xf32>
    %64 = vector.shape_cast %63 : vector<1x1x8x1xf32> to vector<8x1xf32>
    %65 = vector.shape_cast %62 : vector<8x1xf32> to vector<1x1x8x1xf32>
    tpu.vector_store %arg7[%c0_43, %c0_44, %c0_45, %c1_46], %65 {strides = array<i32>} : memref<1x1x8x2xf32, #tpu.memory_space<vmem>>, vector<1x1x8x1xf32>,
    return
  }
  func.func @transform_0(%arg0: i32, %arg1: i32) -> (i32, i32, i32) {
    %c0_i32 = arith.constant 0 : i32
    %c0_i32_0 = arith.constant 0 : i32
    return %arg0, %c0_i32, %arg1 : i32, i32, i32
  }
  func.func @transform_1(%arg0: i32, %arg1: i32) -> (i32, i32, i32) {
    %c1_i32 = arith.constant 1 : i32
    %0 = arith.addi %arg1, %c1_i32 : i32
    %c0_i32 = arith.constant 0 : i32
    %c0_i32_0 = arith.constant 0 : i32
    return %arg0, %c0_i32, %0 : i32, i32, i32
  }
  func.func @transform_2(%arg0: i32, %arg1: i32) -> (i32, i32, i32) {
    %c0_i32 = arith.constant 0 : i32
    %c0_i32_0 = arith.constant 0 : i32
    %c0_i32_1 = arith.constant 0 : i32
    %c0_i32_2 = arith.constant 0 : i32
    return %c0_i32, %c0_i32_0, %c0_i32_1 : i32, i32, i32
  }
  func.func @transform_3(%arg0: i32, %arg1: i32) -> (i32, i32) {
    %c0_i32 = arith.constant 0 : i32
    %c0_i32_0 = arith.constant 0 : i32
    return %c0_i32, %arg1 : i32, i32
  }
  func.func @transform_4(%arg0: i32, %arg1: i32) -> (i32, i32, i32) {
    %c0_i32 = arith.constant 0 : i32
    %c0_i32_0 = arith.constant 0 : i32
    return %arg0, %c0_i32, %arg1 : i32, i32, i32
  }
  func.func @transform_5(%arg0: i32, %arg1: i32) -> (i32, i32, i32, i32) {
    %c0_i32 = arith.constant 0 : i32
    %c0_i32_0 = arith.constant 0 : i32
    %c0_i32_1 = arith.constant 0 : i32
    return %arg0, %arg1, %c0_i32, %c0_i32_0 : i32, i32, i32, i32
  }
}

</mosaic_0001>

<bundles_post_ra>
// kernel: tpu_custom_call.1
= control target key start
LH: loop header
LB: loop body
LE: loop exit
PB: predicated region body
PF: predicated region fallthrough
CT: control target
= control target key end

     0   :  { %s1816_s0 = inlined_call_operand.vmem [shape: bf16[2,8,768], index: 0, kind: input, shape index: {}]   ;;  %s1817_s1 = inlined_call_operand.hbm [shape: bf16[2,8,768], index: 1, kind: input, shape index: {}]   ;;  %s1818_s2 = inlined_call_operand.vmem [shape: bf16[9,8,8], index: 2, kind: input, shape index: {}]   ;;  %s1819_s3 = inlined_call_operand.vmem [shape: f32[1,512], index: 3, kind: input, shape index: {}]   ;;  %s1820_s4 = inlined_call_operand.hbm [shape: bf16[2,8,512], index: 4, kind: output, shape index: {0}]   ;;  %s1821_s5 = inlined_call_operand.vmem [shape: f32[2,2,8,2], index: 5, kind: output, shape index: {1}]  }
   0x1   :  { %1827 = sst [smem:[#allocation14_spill]] %s1816_s0 }
   0x2   :  { %11 = vsyncpa [#allocation3], 0 }
   0x3   :  { %13 = vsyncpa [#allocation3 + $0x1], 0 }
   0x4   :  { %14 = vsyncpa [#allocation4], 0 }
   0x5   :  { %16 = vsyncpa [#allocation4 + $0x1], 0  ;;  %s1514_s18 = smov 0   ;;  %s1516_s19 = smov 0  }
   0x6   :  { %s1518_s20 = smov 0   ;;  %s1520_s21 = smov 0  }
   0x7   :  { %s1522_s22 = smov 0   ;;  %s1524_s23 = smov 0  }
   0x8   :  { %s1526_s24 = smov 0   ;;  %s1528_s25 = smov 0  }
   0x9   :  { %s1530_s26 = smov 0   ;;  %s1532_s27 = smov 0  }
   0xa   :  { %s1534_s28 = smov 0  }
   0xb LB: > { %1828 = sst [smem:[#allocation8_spill]] %s1451_s23  ;;  %s1121_s29 = sadd.s32 4294967295, %s1471_s28   ;;  %s1471_s28 = sphi %s1534_s28, %s22_s28   ;;  %s1467_s27 = sphi %s1532_s27, %s1858_s27   ;;  %s1463_s26 = sphi %s1530_s26, %s1857_s26   ;;  %s1459_s25 = sphi %s1528_s25, %s1856_s25   ;;  %s1455_s24 = sphi %s1526_s24, %s1848_s24   ;;  %s1451_s23 = sphi %s1524_s23, %s1847_s23   ;;  %s1447_s22 = sphi %s1522_s22, %s1855_s22   ;;  %s1443_s21 = sphi %s1520_s21, %s1854_s21   ;;  %s1439_s20 = sphi %s1518_s20, %s1853_s20   ;;  %s1435_s19 = sphi %s1516_s19, %s1852_s19   ;;  %s1431_s18 = sphi %s1514_s18, %s1851_s18  }
   0xc   : > { %1829 = sst [smem:[#allocation9_spill]] %s1463_s26  ;;  %s31_s6 = sadd.s32 1, %s1463_s26 }
   0xd   : > { %s34_s7 = sadd.s32 1, %s1467_s27  ;;  %p32_p0 = scmp.ge.s32.totalorder %s31_s6, 2 }
   0xe   : > { %s73_s8 = sadd.s32 1, %s1451_s23  ;;  %p80_p1 = scmp.ne.s32.totalorder %s1451_s23, %s1447_s22 }
   0xf   : > { %p81_p2 = scmp.eq.s32.totalorder %s1471_s28, 0  ;;  %s1860_s7 = smov (!%p32_p0, %s34_s7), %s1467_s27 }
  0x10   : > { %s1575_s9 = scalar_select %p32_p0, 0, %s31_s6  }
  0x11   : > { %p1579_p3 = por %p81_p2, %p80_p1  ;;  %p36_p4 = scmp.ge.s32.totalorder %s1860_s7, 2 }
  0x12   : > { %1830 = sst [smem:[#allocation10_spill]] %s1575_s9  ;;  %s67_s10 = sadd.s32 1, %s1575_s9 }
  0x13   : > { %s69_s12 = ssub.s32 %s31_s6, %s67_s10  ;;  %p86_p5 = scmp.ne.s32.totalorder %s1447_s22, %s1443_s21 }
  0x14   : > { %p87_p6 = scmp.eq.s32.totalorder %s1121_s29, 0  ;;  %s1862_s7 = smov (%p36_p4, %s1860_s7), 0 }
  0x15   : > { %1832 = sst [smem:[#allocation11_spill]] %s1862_s7  ;;  %s144_s14 = ssub.s32 %s1463_s26, %s1575_s9 }
  0x16   : > { %p1586_p7 = por %p87_p6, %p86_p5  ;;  %s68_s15 = ssub.s32 %s1467_s27, %s1862_s7 }
  0x17   : > { %s148_s16 = sadd.s32 1, %s1439_s20  ;;  %s70_s17 = sor.u32 %s69_s12, %s68_s15 }
  0x18   : > { %s145_s21 = sor.u32 %s144_s14, %s68_s15  ;;  %p71_p8 = scmp.eq.s32.totalorder %s70_s17, 0 }
  0x19   : > { %p146_p9 = scmp.eq.s32.totalorder %s145_s21, 0  ;;  %p158_p10 = scmp.ne.s32.totalorder %s1439_s20, %s1435_s19 }
  0x1a   : > { %p159_p11 = scmp.eq.s32.totalorder %s1121_s29, 3  ;;  %p164_p13 = scmp.ne.s32.totalorder %s1435_s19, %s1431_s18 }
  0x1b   : > { %s1598_s6 = scalar_select %p71_p8, %s1451_s23, %s73_s8  }
  0x1c   : > { %s1601_s10 = scalar_select %p146_p9, %s1439_s20, %s148_s16  }
  0x1d   : > { %1834 = sst [smem:[#allocation12_spill]] %s1598_s6  ;;  %p1603_p12 = por %p159_p11, %p158_p10 }
  0x1e   : > { %1835 = sst [smem:[#allocation13_spill]] %s1601_s10  ;;  %s1837_s7 = sadd.s32 4294967294, %s1471_s28  }
  0x1f   : > { %s1836_s30 = scalar_select %p1603_p12, 1, 0 }
  0x20   : > { %p165_p0 = scmp.eq.s32.totalorder %s1837_s7, 3  ;;  %p1216_p1 = scmp.lt.s32.totalorder %s1471_s28, 4 }
  0x21   : > { %s229_s12 = sand.u32 1, %s1451_s23   ;;  %s1126_s8 = sshll.u32 %s1463_s26, 1 }
  0x22   : > { %p1613_p2 = por %p165_p0, %p164_p13  ;;  %s1125_s29 = sshll.u32 %s229_s12, 3 }
  0x23   : > { %s1013_s15 = smul.u32 6, %s1467_s27  ;;  %s233_s16 = scalar_lea.vmem [#allocation2], %s1125_s29 }
  0x24   : > { %s1838_s14 = scalar_select %p1613_p2, 1, 0 }
  0x25   : > { %s244_s17 = sshll.u32 %s233_s16, 4  ;;  %p1621_p4 = pnand %p1216_p1, %p1579_p3  ;;  %s1625_s17 = int_to_ptr.vmem [resolvable:$true] %s244_s17 }
  0x26   : > { %s1014_s7 = sadd.s32 %s1126_s8, %s1013_s15  ;;  %s230_s11 = scalar_lea.sflag [#allocation3], %s229_s12 }
  0x27   : > { %s1127_s9 = sshll.u32 %s1014_s7, 6  ;;  %p1320_p8 = pneg %p1621_p4 }
  0x28   : > { %s1016_s10 = scalar_lea.hbm %s1817_s1, %s1127_s9  ;;  %s1323_s23 = scalar_lea.hbm %s1817_s1, 768 }
  0x29   : > { %s1631_s26 = scalar_lea.hbm %s1016_s10, 128  ;;  %s1348_s29 = scalar_lea.hbm %s1016_s10, 256 }
  0x2a   : > { %p1319_p6 = scmp.ne.s32.totalorder %s1631_s26, %s1348_s29  ;;  %p1324_p11 = scmp.lt.u32.totalorder %s1631_s26, %s1817_s1 }
  0x2b   : > { %p1325_p13 = scmp.lt.u32.totalorder %s1323_s23, %s1348_s29  ;;  %p1327_p1 = scmp.lt.u32.totalorder %s1348_s29, %s1631_s26 }
  0x2c   : > { %p1321_p9 = pnand %p1320_p8, %p1319_p6 }
  0x2d   : > { %p1326_p0 = por %p1325_p13, %p1324_p11 }
  0x2e   : > { %p1322_p10 = pneg %p1321_p9 }
  0x2f   : > { %p1328_p5 = por %p1327_p1, %p1326_p0 }
  0x31   : > { %p1329_p3 = pnand %p1328_p5, %p1322_p10 }
  0x33   : > { %1332 = shalt.err (!%p1329_p3)
}
  0x34   : > { %s1333_s10 = scalar_lea.vmem %s1625_s17, 128  ;;  %s1473_s12 = smov [#allocation2]  }
  0x35   : > { %p1334_p6 = scmp.ne.s32.totalorder %s1625_s17, %s1333_s10  ;;  %s1338_s16 = sshll.u32 %s1473_s12, 4  ;;  %s1339_s16 = int_to_ptr.vmem [resolvable:$false] %s1338_s16 }
  0x36   : > { %s1340_s7 = scalar_lea.vmem %s1339_s16, 256  ;;  %p1341_p12 = scmp.lt.s32.totalorder %s1625_s17, %s1339_s16 }
  0x37   : > { %p1336_p9 = pnand %p1334_p6, %p1320_p8  ;;  %p1342_p11 = scmp.lt.s32.totalorder %s1340_s7, %s1333_s10 }
  0x39   : > { %p1337_p2 = pneg %p1336_p9  ;;  %p1343_p13 = por %p1342_p11, %p1341_p12 }
  0x3b   : > { %p1344_p0 = pnand %p1343_p13, %p1337_p2 }
  0x3d   : > { %1347 = shalt.err (!%p1344_p0)
}
  0x3e   : > { %1211 = dma.hbm_to_vmem [thread:$0]  (!%p1621_p4), %s1631_s26, 128, %s1625_s17, %s230_s11  }
  0x3f   : > { %p1840_p5 = scmp.lt.s32.totalorder %s1471_s28, 5  ;;  %p1841_p3 = scmp.ge.s32.totalorder %s1471_s28, 1 }
  0x41   : > { %p258_p8 = pnand %p1841_p3, %p1840_p5 }
  0x42   : > { %s263_s29 = sand.u32 (!%p258_p8), 1, %s1447_s22  }
  0x43   : > { %261 = sbr.rel (%p258_p8) target bundleno = 625 (0x271), region = 36  ;;  %s1129_s8 = sshll.u32 (!%p258_p8), %s263_s29, 3 }
  0x44   : > { %s264_s15 = scalar_lea.sflag (!%p258_p8), [#allocation3], %s263_s29  ;;  %s267_s23 = scalar_lea.vmem (!%p258_p8), [#allocation2], %s1129_s8 }
  0x4a   : > { %1422 = dma.done.wait (%p1586_p7), %s264_s15, 128  }
  0x4b   : > { %1424 = vsyncadd (%p1586_p7), %s264_s15, 4294967168  ;;  %s1668_s21 = sshll.u32 %s1455_s24, 1  ;;  %p316_p12 = scmp.lt.s32.totalorder %s1459_s25, 1  ;;  %v1315_v0 = vld [vmem:[%s267_s23] ss:$0 sps:$4 sm:$0xff]   ;;  %v1474_v1 = vmov 0   ;;  %v918_v63 = vlaneseq }
  0x4c   : > { %p318_p2 = scmp.lt.s32.totalorder %s1668_s21, 5  ;;  %644 = vmatprep.mubr.bf16.mxu0 %v1474_v1  ;;  %407 = vmatprep.mubr.bf16.mxu1 %v1474_v1  ;;  %s1475_s13 = smov 109   ;;  %vm600_vm0 = vcmask 891904   ;;  %vm368_vm1 = vcmask 1043456   ;;  %vm361_vm2 = vcmask 1039360   ;;  %vm364_vm3 = vcmask 64512  }
  0x4d   : > { %s1673_s26 = scalar_select %p316_p12, %s1459_s25, 1  ;;  %598 = vrot.lane.b32.xlu1 %v1315_v0, %s1475_s13  ;;  %v1150_v13 = vld [vmem:[%s1818_s2 + $0x10] sm:$0xf]  ;;  %v1139_v19 = vld [vmem:[%s1818_s2 + $0x4] sm:$0xf]  ;;  %vm663_vm4 = vcmask 883712  }
  0x4e   : > { %s319_s17 = scalar_select %p318_p2, %s1668_s21, 5  ;;  %vm726_vm5 = vcmask 752640   ;;  %v1153_v28 = vld [vmem:[%s1818_s2 + $0x14] sm:$0xf]  ;;  %vm474_vm6 = vcmask 1031168   ;;  %vm789_vm7 = vcmask 744448  }
  0x4f   : > { %s1203_s11 = smul.u32 6, %s1673_s26  ;;  %s1842_s0 = sld [smem:[#allocation14_spill]]  ;;  %v352_v34 = vld [vmem:[%s1818_s2] sm:$0xf]  ;;  %v1156_v42 = vld [vmem:[%s1818_s2 + $0x18] sm:$0xf] }
  0x50   : > { %s1476_s7 = smov 127   ;;  %s1477_s29 = smov 108   ;;  %vm537_vm8 = vcmask 900096   ;;  %v1144_v48 = vld [vmem:[%s1818_s2 + $0x8] sm:$0xf]  ;;  %vm852_vm9 = vcmask 736256  }
  0x51   : > { %s321_s9 = sadd.s32 %s1203_s11, %s319_s17  ;;  %359 = vrot.lane.b32.xlu1 %v1315_v0, %s1476_s7  ;;  %s1478_s8 = smov 92   ;;  %v1159_v56 = vld [vmem:[%s1818_s2 + $0x1c] sm:$0xf]  ;;  %v1147_v61 = vld [vmem:[%s1818_s2 + $0xc] sm:$0xf] }
  0x52   : > { %s1132_s6 = sshll.u32 %s321_s9, 2  ;;  %s1479_s15 = smov 126   ;;  %v1162_v62 = vld [vmem:[%s1818_s2 + $0x20] sm:$0xf] }
  0x53   : > { %s1480_s23 = smov 91   ;;  %s1481_s17 = smov 110  }
  0x54   : > { %s1482_s11 = smov 90   ;;  %p328_p7 = scmp.lt.s32.totalorder %s1668_s21, 3 }
  0x55   : > { %s323_s16 = scalar_lea.vmem %s1842_s0, %s1132_s6  ;;  %p1843_p10 = scmp.ne.s32.totalorder %s1836_s30, 0 }
  0x56   : > { %v342_v2 = vld [vmem:[%s323_s16] sm:$0xff]  ;;  %s329_s16 = scalar_select %p328_p7, %s1668_s21, 3 }
  0x57   : > { %v1136_v3 = vcombine.low %v342_v2, %v342_v2  ;;  %v1137_v4 = vcombine.high %v342_v2, %v342_v2 }
  0x59   : > { %594 = vrot.lane.b32.xlu0 %v1136_v3, %s1475_s13  ;;  %355 = vrot.lane.b32.xlu1 %v1136_v3, %s1476_s7  ;;  %v420_v22 = vsel %vm368_vm1, %v1136_v3, 0 }
  0x5d   : > { %596 = vrot.lane.b32.xlu0 %v1137_v4, %s1475_s13  ;;  %659 = vrot.lane.b32.xlu1 %v1137_v4, %s1477_s29 }
  0x61   : > { %357 = vrot.lane.b32.xlu0 %v1137_v4, %s1476_s7  ;;  %720 = vrot.lane.b32.xlu1 %v1136_v3, %s1478_s8 }
  0x65   : > { %657 = vrot.lane.b32.xlu0 %v1136_v3, %s1477_s29  ;;  %724 = vrot.lane.b32.xlu1 %v1315_v0, %s1478_s8 }
  0x69   : > { %661 = vrot.lane.b32.xlu0 %v1315_v0, %s1477_s29  ;;  %470 = vrot.lane.b32.xlu1 %v1137_v4, %s1479_s15 }
  0x6d   : > { %722 = vrot.lane.b32.xlu0 %v1137_v4, %s1478_s8  ;;  %783 = vrot.lane.b32.xlu1 %v1136_v3, %s1480_s23  ;;  %s330_s8 = scalar_lea.vmem %s1819_s3, %s329_s16 }
  0x71   : > { %468 = vrot.lane.b32.xlu0 %v1136_v3, %s1479_s15  ;;  %787 = vrot.lane.b32.xlu1 %v1315_v0, %s1480_s23 }
  0x75   : > { %472 = vrot.lane.b32.xlu0 %v1315_v0, %s1479_s15  ;;  %533 = vrot.lane.b32.xlu1 %v1137_v4, %s1481_s17  ;;  %s302_s15 = sand.u32 1, %s1435_s19  }
  0x76   : > { %s943_s7 = scalar_lea.sflag [#allocation4], %s302_s15 }
  0x79   : > { %785 = vrot.lane.b32.xlu0 %v1137_v4, %s1480_s23  ;;  %846 = vrot.lane.b32.xlu1 %v1136_v3, %s1482_s11  ;;  %s1130_s23 = sshll.u32 %s302_s15, 3 }
  0x7d   : > { %531 = vrot.lane.b32.xlu0 %v1136_v3, %s1481_s17  ;;  %850 = vrot.lane.b32.xlu1 %v1315_v0, %s1482_s11 }
  0x81   : > { %535 = vrot.lane.b32.xlu0 %v1315_v0, %s1481_s17  ;;  %v919_v0 = vshrl.u32 %v918_v63, 7  ;;  %s304_s17 = scalar_lea.vmem [#allocation5], %s1130_s23 }
  0x82   : > { %s967_s13 = sshll.u32 %s304_s17, 4  ;;  %s968_s13 = int_to_ptr.vmem [resolvable:$true] %s967_s13 }
  0x83   : > { %s1349_s29 = scalar_lea.vmem %s968_s13, 128 }
  0x84   : > { %p1350_p4 = scmp.ne.s32.totalorder %s968_s13, %s1349_s29 }
  0x85   : > { %848 = vrot.lane.b32.xlu0 %v1137_v4, %s1482_s11  ;;  %s1168_s11 = sshll.u32 %s1459_s25, 2 }
  0x86   : > { %s963_s9 = sadd.s32 %s1168_s11, %s1668_s21  ;;  %p1351_p1 = pnand %p1350_p4, %p1843_p10 }
  0x87   : > { %s1169_s6 = sshll.u32 %s963_s9, 6 }
  0x88   : > { %s1754_s16 = scalar_lea.hbm %s1820_s4, %s1169_s6  ;;  %p1352_p6 = pneg %p1351_p1 }
  0xbf   : > { %v599_v5 = vpop.permute.xlu1 %598 }
  0xc3   : > { %v360_v7 = vpop.permute.xlu1 %359 }
  0xcb   : > { %v595_v6 = vpop.permute.xlu0 %594  ;;  %v356_v9 = vpop.permute.xlu1 %355 }
  0xcf   : > { %v597_v8 = vpop.permute.xlu0 %596  ;;  %v660_v15 = vpop.permute.xlu1 %659 }
  0xd0   : > { %v602_v10 = vsel %vm600_vm0, %v597_v8, %v599_v5  ;;  %v601_v11 = vsel %vm600_vm0, %v595_v6, %v597_v8  ;;  %v920_v5 = vsub.s32 0, %v919_v0  ;;  %v916_v6 = vld [vmem:[%s330_s8] sm:$0x3]  ;;  %s1483_s8 = smov [#allocation5]  }
  0xd1   : > { %1151 = vmatprep.subr.msk.bf16.mxu0 %vm368_vm1, %v602_v10  ;;  %v607_v12 = vsel %vm368_vm1, %v601_v11, 0  ;;  %s1353_s23 = sshll.u32 %s1483_s8, 4  ;;  %s1354_s23 = int_to_ptr.vmem [resolvable:$false] %s1353_s23 }
  0xd2   : > { %613 = vmatpush1.bf16.msra.mxu0 %v607_v12  ;;  %v921_v8 = vrot.slane %v916_v6, %v920_v5  ;;  %s1355_s0 = scalar_lea.vmem %s1354_s23, 256  ;;  %p1356_p9 = scmp.lt.s32.totalorder %s968_s13, %s1354_s23 }
  0xd3   : > { %v358_v14 = vpop.permute.xlu0 %357  ;;  %v721_v21 = vpop.permute.xlu1 %720  ;;  %p1357_p11 = scmp.lt.s32.totalorder %s1355_s0, %s1349_s29 }
  0xd4   : > { %v363_v16 = vsel %vm361_vm2, %v358_v14, %v360_v7  ;;  %v362_v17 = vsel %vm361_vm2, %v356_v9, %v358_v14  ;;  %v924_v7 = vsub.s32 1, %v919_v0 }
  0xd5   : > { %1140 = vmatprep.subr.msk.bf16.mxu1 %vm368_vm1, %v363_v16  ;;  %1152 = vmatmul.mubr.msk.bf16.vlgmr.msra.gmra.mrb[0].mxu0 %vm364_vm3, %v1150_v13  ;;  %v370_v18 = vsel %vm368_vm1, %v362_v17, 0  ;;  %p1358_p13 = por %p1357_p11, %p1356_p9 }
  0xd6   : > { %376 = vmatpush1.bf16.msra.mxu1 %v370_v18  ;;  %707 = vmatprep.mubr.bf16.mxu0 %v1474_v1  ;;  %v925_v10 = vrot.slane %v916_v6, %v924_v7 }
  0xd7   : > { %v658_v20 = vpop.permute.xlu0 %657  ;;  %1142 = vmatprep.subr.msk.bf16.mxu1 %vm368_vm1, %v1137_v4  ;;  %v725_v25 = vpop.permute.xlu1 %724  ;;  %p1359_p0 = pnand %p1358_p13, %p1352_p6 }
  0xd8   : > { %v664_v23 = vsel %vm663_vm4, %v658_v20, %v660_v15 }
  0xd9   : > { %1141 = vmatmul.mubr.msk.bf16.vlgmr.msra.gmra.mrb[0].mxu1 %vm364_vm3, %v1139_v19  ;;  %v670_v27 = vsel %vm368_vm1, %v664_v23, 0 }
  0xda   : > { %426 = vmatpush1.bf16.msra.mxu1 %v420_v22  ;;  %457 = vmatprep.mubr.bf16.mxu1 %v1474_v1 }
  0xdb   : > { %v662_v24 = vpop.permute.xlu0 %661  ;;  %v471_v30 = vpop.permute.xlu1 %470 }
  0xdc   : > { %v665_v26 = vsel %vm663_vm4, %v660_v15, %v662_v24 }
  0xdd   : > { %1154 = vmatprep.subr.msk.bf16.mxu0 %vm368_vm1, %v665_v26 }
  0xde   : > { %676 = vmatpush1.bf16.msra.mxu0 %v670_v27 }
  0xdf   : > { %v723_v29 = vpop.permute.xlu0 %722  ;;  %v784_v36 = vpop.permute.xlu1 %783 }
  0xe0   : > { %v727_v31 = vsel %vm726_vm5, %v721_v21, %v723_v29  ;;  %v728_v32 = vsel %vm726_vm5, %v723_v29, %v725_v25 }
  0xe1   : > { %1155 = vmatmul.mubr.msk.bf16.vlgmr.msra.gmra.mrb[0].mxu0 %vm364_vm3, %v1153_v28  ;;  %v733_v33 = vsel %vm368_vm1, %v727_v31, 0  ;;  %1157 = vmatprep.subr.msk.bf16.mxu0 %vm368_vm1, %v728_v32 }
  0xe2   : > { %739 = vmatpush1.bf16.msra.mxu0 %v733_v33  ;;  %770 = vmatprep.mubr.bf16.mxu0 %v1474_v1 }
  0xe3   : > { %v469_v35 = vpop.permute.xlu0 %468  ;;  %v788_v40 = vpop.permute.xlu1 %787 }
  0xe4   : > { %v475_v37 = vsel %vm474_vm6, %v469_v35, %v471_v30 }
  0xe5   : > { %1143 = vmatmul.mubr.msk.bf16.vlgmr.msra.gmra.mrb[0].mxu1 %vm364_vm3, %v352_v34  ;;  %v481_v38 = vsel %vm368_vm1, %v475_v37, 0 }
  0xe6   : > { %518 = vmatprep.mubr.bf16.mxu1 %v1474_v1 }
  0xe7   : > { %v473_v39 = vpop.permute.xlu0 %472  ;;  %v534_v44 = vpop.permute.xlu1 %533 }
  0xe8   : > { %v476_v41 = vsel %vm474_vm6, %v471_v30, %v473_v39 }
  0xe9   : > { %1145 = vmatprep.subr.msk.bf16.mxu1 %vm368_vm1, %v476_v41 }
  0xea   : > { %487 = vmatpush1.bf16.msra.mxu1 %v481_v38 }
  0xeb   : > { %v786_v43 = vpop.permute.xlu0 %785  ;;  %v847_v50 = vpop.permute.xlu1 %846 }
  0xec   : > { %v790_v45 = vsel %vm789_vm7, %v784_v36, %v786_v43  ;;  %v791_v46 = vsel %vm789_vm7, %v786_v43, %v788_v40 }
  0xed   : > { %1158 = vmatmul.mubr.msk.bf16.vlgmr.msra.gmra.mrb[0].mxu0 %vm364_vm3, %v1156_v42  ;;  %v796_v47 = vsel %vm368_vm1, %v790_v45, 0  ;;  %1160 = vmatprep.subr.msk.bf16.mxu0 %vm368_vm1, %v791_v46 }
  0xee   : > { %802 = vmatpush1.bf16.msra.mxu0 %v796_v47  ;;  %833 = vmatprep.mubr.bf16.mxu0 %v1474_v1 }
  0xef   : > { %v532_v49 = vpop.permute.xlu0 %531  ;;  %v851_v55 = vpop.permute.xlu1 %850 }
  0xf0   : > { %v538_v51 = vsel %vm537_vm8, %v532_v49, %v534_v44 }
  0xf1   : > { %1146 = vmatmul.mubr.msk.bf16.vlgmr.msra.gmra.mrb[0].mxu1 %vm364_vm3, %v1144_v48  ;;  %v544_v52 = vsel %vm368_vm1, %v538_v51, 0 }
  0xf2   : > { %581 = vmatprep.mubr.bf16.mxu1 %v1474_v1 }
  0xf3   : > { %v536_v53 = vpop.permute.xlu0 %535 }
  0xf4   : > { %v539_v54 = vsel %vm537_vm8, %v534_v44, %v536_v53 }
  0xf5   : > { %1148 = vmatprep.subr.msk.bf16.mxu1 %vm368_vm1, %v539_v54 }
  0xf6   : > { %550 = vmatpush1.bf16.msra.mxu1 %v544_v52 }
  0xf7   : > { %v849_v57 = vpop.permute.xlu0 %848 }
  0xf8   : > { %v853_v58 = vsel %vm852_vm9, %v847_v50, %v849_v57  ;;  %v854_v59 = vsel %vm852_vm9, %v849_v57, %v851_v55 }
  0xf9   : > { %1161 = vmatmul.mubr.msk.bf16.vlgmr.msra.gmra.mrb[0].mxu0 %vm364_vm3, %v1159_v56  ;;  %v859_v60 = vsel %vm368_vm1, %v853_v58, 0  ;;  %1163 = vmatprep.subr.msk.bf16.mxu0 %vm368_vm1, %v854_v59 }
  0xfa   : > { %865 = vmatpush1.bf16.msra.mxu0 %v859_v60  ;;  %896 = vmatprep.mubr.bf16.mxu0 %v1474_v1 }
  0xfd   : > { %1149 = vmatmul.mubr.msk.bf16.vlgmr.msra.gmra.mrb[0].mxu1 %vm364_vm3, %v1147_v61 }
 0x105   : > { %1164 = vmatmul.mubr.msk.bf16.vlgmr.msra.gmra.mrb[0].mxu0 %vm364_vm3, %v1162_v62 }
 0x1d0   : > { %v583_v2 = vpop.f32.mrb[0].mxu1 }
 0x1d1   : > { %v585_v3 = vpop.f32.mrb[1].mxu1 }
 0x1d2   : > { %v587_v1 = vpop.f32.mrb[2].mxu1 }
 0x1d3   : > { %v588_v4 = vpop.f32.mrb[3].mxu1 }
 0x1d8   : > { %v898_v9 = vpop.f32.mrb[0].mxu0 }
 0x1d9   : > { %v1173_v11 = vadd.f32 %v898_v9, %v583_v2  ;;  %v900_v12 = vpop.f32.mrb[1].mxu0 }
 0x1da   : > { %v1174_v13 = vadd.f32 %v900_v12, %v585_v3  ;;  %v902_v14 = vpop.f32.mrb[2].mxu0 }
 0x1db   : > { %v928_v15 = vmul.f32 %v1173_v11, %v921_v8  ;;  %v903_v16 = vpop.f32.mrb[3].mxu0 }
 0x1dc   : > { %v1172_v17 = vpack.c.bf16 %v1174_v13, %v1173_v11  ;;  %v929_v18 = vmul.f32 %v1174_v13, %v925_v10 }
 0x1dd   : > { %v935_v19 = vmul.f32 %v928_v15, %v928_v15 }
 0x1de   : > { %v930_v20 = vadd.f32 %v929_v18, %v928_v15  ;;  %v936_v21 = vmul.f32 %v929_v18, %v929_v18  ;;  %915 = vst [vmem:[%s304_s17] sm:$0xff] %v1172_v17 }
 0x1e0   : > { %931 = vadd.xlane.f32.xlu0 %v930_v20  ;;  %v937_v22 = vadd.f32 %v936_v21, %v935_v19 }
 0x1e2   : > { %938 = vadd.xlane.f32.xlu1 %v937_v22 }
 0x1e3   : > { %1362 = shalt.err (!%p1359_p0)
}
 0x1e4   : > { %s1363_s25 = scalar_lea.hbm %s1754_s16, 128  ;;  %s1367_s17 = scalar_lea.hbm %s1820_s4, 512 }
 0x1e5   : > { %p1364_p5 = scmp.ne.s32.totalorder %s1754_s16, %s1363_s25  ;;  %p1368_p12 = scmp.lt.u32.totalorder %s1754_s16, %s1820_s4 }
 0x1e6   : > { %p1369_p2 = scmp.lt.u32.totalorder %s1367_s17, %s1363_s25  ;;  %p1371_p4 = scmp.lt.u32.totalorder %s1363_s25, %s1754_s16 }
 0x1e7   : > { %p1365_p3 = pnand %p1364_p5, %p1843_p10 }
 0x1e8   : > { %p1370_p7 = por %p1369_p2, %p1368_p12 }
 0x1e9   : > { %p1366_p8 = pneg %p1365_p3 }
 0x1ea   : > { %p1372_p1 = por %p1371_p4, %p1370_p7 }
 0x1ec   : > { %p1373_p6 = pnand %p1372_p1, %p1366_p8 }
 0x1ee   : > { %1376 = shalt.err (!%p1373_p6)
}
 0x1ef   : > { %1206 = dma.vmem_to_hbm [thread:$0]  (%p1843_p10), %s968_s13, 128, %s1754_s16, %s943_s7   ;;  %vm933_vm10 = vcmask 7168   ;;  %vm940_vm11 = vcmask 15368  }
 0x1f0   : > { %p335_p9 = scmp.lt.s32.totalorder %s1455_s24, 1  ;;  %s1134_s0 = sshll.u32 %s1673_s26, 1 }
 0x1f2   : > { %s1864_s24 = smov (!%p335_p9, %s1455_s24), 1 }
 0x1f3   : > { %s338_s6 = sadd.s32 %s1134_s0, %s1864_s24 }
 0x1f4   : > { %s1135_s10 = sshll.u32 %s338_s6, 3 }
 0x1f5   : > { %s340_s8 = scalar_lea.vmem %s1821_s5, %s1135_s10 }
 0x26d   : > { %v932_v23 = vpop.xlane.xlu0 %931 }
 0x26e   : > { %934 = vst.msk [vmem:[%s340_s8] sm:$0xff] %vm933_vm10, %v932_v23 }
 0x26f   : > { %v939_v24 = vpop.xlane.xlu1 %938 }
 0x270   : > { %941 = vst.msk [vmem:[%s340_s8] sm:$0xff] %vm940_vm11, %v939_v24 }
 0x271 PF: > { %p1217_p10 = scmp.ge.s32.totalorder %s1471_s28, 2  ;;  %s982_s30 = sand.u32 1, %s1431_s18  }
 0x272   : > { %p1844_p11 = scmp.ne.s32.totalorder %s1838_s14, 0  ;;  %s983_s24 = scalar_lea.sflag [#allocation4], %s982_s30 }
 0x274   : > { %p1213_p13 = pnand %p1217_p10, %p1844_p11 }
 0x276   : > { %1426 = dma.done.wait (!%p1213_p13), %s983_s24, 128  }
 0x277   : > { %1428 = vsyncadd (!%p1213_p13), %s983_s24, 4294967168  ;;  %s22_s28 = sadd.s32 1, %s1471_s28   ;;  %s1845_s26 = sld [smem:[#allocation13_spill]] }
 0x278   : > { %p19_p0 = scmp.ge.s32.totalorder %s22_s28, 6   ;;  %s1846_s13 = sld [smem:[#allocation8_spill]] }
 0x279   : > { %s1847_s23 = sld [smem:[#allocation12_spill]]  ;;  %s1848_s24 = sld [smem:[#allocation9_spill]] }
 0x27a   : > { %s1849_s16 = sld [smem:[#allocation10_spill]]  ;;  %s1850_s7 = sld [smem:[#allocation11_spill]] }
 0x27b   : > { %s1851_s18 = smov %s1435_s19  ;;  %s1852_s19 = smov %s1439_s20 }
 0x27c   : > { %s1854_s21 = smov %s1447_s22  ;;  %s1856_s25 = smov %s1467_s27 }
 0x27d   : > { %s1853_s20 = smov %s1845_s26  ;;  %21 = sbr.rel (!%p19_p0) target bundleno = 11 (0xb), region = 107 }
 0x27e   : > { %s1855_s22 = smov %s1846_s13 }
 0x280   : > { %s1857_s26 = smov %s1849_s16  ;;  %s1858_s27 = smov %s1850_s7 }
 0x284   :  { %999 = vsyncpa [#allocation3], 1 }
 0x285   :  { %1001 = vsyncpa [#allocation3 + $0x1], 1 }
 0x286   :  { %1002 = vsyncpa [#allocation4], 1 }
 0x287   :  { %1004 = vsyncpa [#allocation4 + $0x1], 1 }

</bundles_post_ra>
